<compile_context>
chip_gen: v5e
topology: v5e:2x2
jax: 0.10.0
libtpu: 0.0.40
codegen_flags: <defaults>
</compile_context>

<pallas_src>
import functools

import jax
import jax.numpy as jnp
from jax.experimental import pallas as pl
from jax.experimental.pallas import tpu as pltpu


def _int_pow(x, n: int):
    """x**n for a static positive integer n via binary exponentiation (VPU muls)."""
    assert n >= 1
    if n == 1:
        return x
    half = _int_pow(x * x, n // 2)
    return half * x if (n % 2) else half


def _kd_loss_kernel(x_ref, t_ref, tgt_ref, part_ref, kl_acc, ce_acc, *,
                    temperature, exp_power, n_rows, blocks_per_core):
    c = pl.program_id(0)          # core-split axis ("parallel")
    i = pl.program_id(1)          # row-block axis ("arbitrary")

    @pl.when(i == 0)
    def _init():
        kl_acc[...] = jnp.zeros_like(kl_acc)
        ce_acc[...] = jnp.zeros_like(ce_acc)

    x = x_ref[...].astype(jnp.float32)        # (TN, C) student logits tile
    t = t_ref[...].astype(jnp.float32)        # (TN, C) teacher logits tile
    tgt = tgt_ref[...]                        # (TN, 1) int32 class indices
    tn, cc = x.shape
    inv_T = 1.0 / temperature                 # T > 0 (asserted in the wrapper)

    # ---- student: shared row max (max(x/T) == max(x)/T for T > 0) ----
    x_max = jnp.max(x, axis=1, keepdims=True)               # (TN,1)
    x_sh = x - x_max
    xs_sh = x_sh * inv_T
    es = jnp.exp(xs_sh)                                      # full-tile exp #1
    sum_es = jnp.sum(es, axis=1, keepdims=True)
    logZ_s = jnp.log(sum_es)

    # exp(x_sh) for CE: reuse es**T when T is a small integer (no extra EUP exp)
    if exp_power is not None:
        e1 = _int_pow(es, exp_power)
    else:
        e1 = jnp.exp(x_sh)
    logZ1 = jnp.log(jnp.sum(e1, axis=1, keepdims=True))

    # ---- teacher softmax pieces at temperature T ----
    ts = t * inv_T
    ts_sh = ts - jnp.max(ts, axis=1, keepdims=True)
    te = jnp.exp(ts_sh)                                      # full-tile exp #2
    sum_te = jnp.sum(te, axis=1, keepdims=True)
    logZ_t = jnp.log(sum_te)

    # ---- KL per row (algebraic rewrite, q/log_q/log_p_s never materialized) ----
    kl_num = jnp.sum(te * (ts_sh - xs_sh), axis=1, keepdims=True)
    kl_row = kl_num * pl.reciprocal(sum_te, approx=False) + (logZ_s - logZ_t)

    # ---- CE per row: -log p[target] = logZ1 - x_sh[target] ----
    lane_ids = jax.lax.broadcasted_iota(jnp.int32, (tn, cc), 1)
    # TODO(synk): PyTorch cross_entropy's ignore_index=-100 is not handled;
    # all targets are assumed to be valid class indices.
    picked = jnp.sum(jnp.where(lane_ids == tgt, x_sh, 0.0), axis=1, keepdims=True)
    ce_row = logZ1 - picked

    # ---- mask rows that belong to padded / out-of-range blocks ----
    block_idx = c * blocks_per_core + i        # intended (unclamped) block index
    row_ids = jax.lax.broadcasted_iota(jnp.int32, (tn, 1), 0) + block_idx * tn
    valid = row_ids < n_rows
    kl_acc[...] += jnp.where(valid, kl_row, 0.0)
    ce_acc[...] += jnp.where(valid, ce_row, 0.0)

    @pl.when(i == pl.num_programs(1) - 1)
    def _finalize():
        kl_sum = jnp.sum(kl_acc[...])
        ce_sum = jnp.sum(ce_acc[...])
        rows = jax.lax.broadcasted_iota(jnp.int32, (1, 8, 128), 1)
        # sublane 0 carries kl_sum, sublane 1 carries ce_sum (lane-dense store)
        part_ref[...] = jnp.where(rows == 0, kl_sum,
                                  jnp.where(rows == 1, ce_sum, 0.0))


def kd_loss(outputs, teacher_outputs, targets, *, alpha, temperature,
            block_rows=None):
    """Pallas implementation of KDLoss.forward. Returns a scalar float32."""
    N, C = outputs.shape
    assert teacher_outputs.shape == (N, C)
    assert float(temperature) > 0.0, "KDLoss temperature must be positive"
    itemsize = jnp.dtype(outputs.dtype).itemsize

    # dtype-aware sublane packing (f32: 8, bf16: 16, int8/fp8: 32)
    sub = 8 * max(1, 4 // itemsize)

    if block_rows is None:
        # Budget covers the 2 double-buffered logit input tiles PLUS ~8
        # f32 tile-sized intermediates, so the tile really fits under the
        # scoped-VMEM ceiling on every generation (incl. v7x's 64 MiB VMEM).
        budget = 16 * 1024 * 1024
        per_row = 2 * 2 * C * itemsize + 8 * C * 4
        block_rows = max(sub, budget // max(per_row, 1))
    tn = int(min(block_rows, N))
    if tn < N:
        tn = max(sub, (tn // sub) * sub)
    num_blocks = pl.cdiv(N, tn)

    n_split = 2                         # leading "parallel" axis -> both v7x TCs
    bpc = pl.cdiv(num_blocks, n_split)  # row blocks handled per split

    T = float(temperature)
    exp_power = int(T) if (T == int(T) and 1 <= int(T) <= 8) else None

    tgt2d = targets.astype(jnp.int32).reshape(N, 1)

    def tile_map(c, i):
        # Clamp to the last real block; overrun rows are masked in-kernel.
        return (jnp.minimum(c * bpc + i, num_blocks - 1), 0)

    kernel = functools.partial(
        _kd_loss_kernel,
        temperature=T, exp_power=exp_power,
        n_rows=N, blocks_per_core=bpc)

    cost = pl.CostEstimate(
        flops=int(14 * N * C),
        transcendentals=int(2 * N * C),
        bytes_accessed=int(2 * N * C * itemsize + N * 4 + n_split * 8 * 128 * 4),
    )

    partials = pl.pallas_call(
        kernel,
        out_shape=jax.ShapeDtypeStruct((n_split, 8, 128), jnp.float32),
        grid=(n_split, bpc),
        in_specs=[
            pl.BlockSpec((tn, C), tile_map),   # student logits tile
            pl.BlockSpec((tn, C), tile_map),   # teacher logits tile
            pl.BlockSpec((tn, 1), tile_map),   # per-row targets
        ],
        out_specs=pl.BlockSpec((1, 8, 128), lambda c, i: (c, 0, 0)),
        scratch_shapes=[pltpu.VMEM((tn, 1), jnp.float32),   # running KL column
                        pltpu.VMEM((tn, 1), jnp.float32)],  # running CE column
        compiler_params=pltpu.CompilerParams(
            dimension_semantics=("parallel", "arbitrary"),
            vmem_limit_bytes=48 * 1024 * 1024,
        ),
        cost_estimate=cost,
    )(outputs, teacher_outputs, tgt2d)

    # Combine the per-core partials and apply the KD weighting (scalar work).
    kl_sum = jnp.sum(partials[:, 0, 0])
    ce_sum = jnp.sum(partials[:, 1, 0])
    kl = kl_sum / float(N * C)          # F.kl_div default 'mean' over N*C elems
    ce = ce_sum / float(N)              # F.cross_entropy default 'mean' over N
    return kl * (float(alpha) * T * T) + ce * (1.0 - float(alpha))


def _kd_loss_ref(outputs, teacher_outputs, targets, *, alpha, temperature):
    """Plain-JAX reference mirroring the PyTorch forward (for sanity check)."""
    T = temperature
    log_p_s = jax.nn.log_softmax(outputs / T, axis=1)
    q = jax.nn.softmax(teacher_outputs / T, axis=1)
    kl_elem = jnp.where(q > 0, q * jnp.log(q), 0.0) - q * log_p_s
    kl = jnp.mean(kl_elem)                              # F.kl_div default 'mean'
    log_p = jax.nn.log_softmax(outputs, axis=1)
    ce = -jnp.mean(jnp.take_along_axis(log_p, targets[:, None], axis=1))
    return kl * alpha * T * T + ce * (1.0 - alpha)


if __name__ == "__main__":
    # Small shapes; N deliberately NOT a multiple of the tile rows so the
    # multi-block accumulation, last-block masking, and the fully-masked
    # overrun block on the second core split are all exercised.
    N, C = 20, 32
    alpha, temperature = 0.7, 4.0

    key = jax.random.PRNGKey(0)
    k1, k2, k3 = jax.random.split(key, 3)
    outputs = jax.random.normal(k1, (N, C), dtype=jnp.float32)
    teacher_outputs = jax.random.normal(k2, (N, C), dtype=jnp.float32)
    targets = jax.random.randint(k3, (N,), 0, C, dtype=jnp.int32)

    ref = _kd_loss_ref(outputs, teacher_outputs, targets,
                       alpha=alpha, temperature=temperature)

    # Multi-block path (3 row blocks split across the 2-way parallel axis).
    loss = kd_loss(outputs, teacher_outputs, targets,
                   alpha=alpha, temperature=temperature, block_rows=8)
    jax.block_until_ready(loss)
    assert jnp.allclose(loss, ref, atol=2e-5, rtol=2e-5), (loss, ref)

    # Auto-sized single-block path (full-extent blocks, masked second split).
    loss2 = kd_loss(outputs, teacher_outputs, targets,
                    alpha=alpha, temperature=temperature)
    jax.block_until_ready(loss2)
    assert jnp.allclose(loss2, ref, atol=2e-5, rtol=2e-5), (loss2, ref)

    print("KERNEL_OK")
</pallas_src>

<mosaic_0001>
module attributes {stable_mosaic.version = 11 : i64} {
  func.func @_kd_loss_kernel(%arg0: i32, %arg1: i32, %arg2: memref<8x32xf32, #tpu.memory_space<vmem>>, %arg3: memref<8x32xf32, #tpu.memory_space<vmem>>, %arg4: memref<8x1xi32, #tpu.memory_space<vmem>>, %arg5: memref<1x8x128xf32, #tpu.memory_space<vmem>>, %arg6: memref<8x1xf32, #tpu.memory_space<vmem>>, %arg7: memref<8x1xf32, #tpu.memory_space<vmem>>) attributes {dimension_semantics = [#tpu.dimension_semantics<parallel>, #tpu.dimension_semantics<arbitrary>], iteration_bounds = array<i64: 2, 2>, scalar_prefetch = 0 : i64, scratch_operands = 2 : i64, tpu.core_type = #tpu.core_type<tc>, window_params = [{transform_indices = @transform_0, window_bounds = array<i64: 8, 32>}, {transform_indices = @transform_1, window_bounds = array<i64: 8, 32>}, {transform_indices = @transform_2, window_bounds = array<i64: 8, 1>}, {transform_indices = @transform_3, window_bounds = array<i64: 1, 8, 128>}]} {
    %c0_i32 = arith.constant 0 : i32
    %0 = arith.cmpi eq, %arg1, %c0_i32 : i32
    %1 = arith.extui %0 : i1 to i32
    %c0_i32_0 = arith.constant 0 : i32
    %2 = arith.cmpi ne, %1, %c0_i32_0 : i32
    scf.if %2 {
      %cst_26 = arith.constant 0.000000e+00 : f32
      %68 = vector.broadcast %cst_26 : f32 to vector<8x1xf32>
      %c0_27 = arith.constant 0 : index
      %c0_28 = arith.constant 0 : index
      %69 = vector.load %arg6[%c0_27, %c0_28] : memref<8x1xf32, #tpu.memory_space<vmem>>, vector<8x1xf32>
      tpu.vector_store %arg6[%c0_27, %c0_28], %68 {strides = array<i32>} : memref<8x1xf32, #tpu.memory_space<vmem>>, vector<8x1xf32>,
      %cst_29 = arith.constant 0.000000e+00 : f32
      %70 = vector.broadcast %cst_29 : f32 to vector<8x1xf32>
      %c0_30 = arith.constant 0 : index
      %c0_31 = arith.constant 0 : index
      %71 = vector.load %arg7[%c0_30, %c0_31] : memref<8x1xf32, #tpu.memory_space<vmem>>, vector<8x1xf32>
      tpu.vector_store %arg7[%c0_30, %c0_31], %70 {strides = array<i32>} : memref<8x1xf32, #tpu.memory_space<vmem>>, vector<8x1xf32>,
    } else {
    }
    %c0 = arith.constant 0 : index
    %c0_1 = arith.constant 0 : index
    %3 = vector.load %arg2[%c0, %c0_1] : memref<8x32xf32, #tpu.memory_space<vmem>>, vector<8x32xf32>
    %c0_2 = arith.constant 0 : index
    %c0_3 = arith.constant 0 : index
    %4 = vector.load %arg3[%c0_2, %c0_3] : memref<8x32xf32, #tpu.memory_space<vmem>>, vector<8x32xf32>
    %c0_4 = arith.constant 0 : index
    %c0_5 = arith.constant 0 : index
    %5 = vector.load %arg4[%c0_4, %c0_5] : memref<8x1xi32, #tpu.memory_space<vmem>>, vector<8x1xi32>
    %cst = arith.constant dense<0xFF800000> : vector<8xf32>
    %6 = vector.multi_reduction <maximumf>, %3, %cst [1] : vector<8x32xf32> to vector<8xf32>
    %7 = vector.shape_cast %6 : vector<8xf32> to vector<8x1xf32>
    %8 = vector.broadcast %7 : vector<8x1xf32> to vector<8x32xf32>
    %9 = arith.subf %3, %8 : vector<8x32xf32>
    %cst_6 = arith.constant 2.500000e-01 : f32
    %10 = vector.broadcast %cst_6 : f32 to vector<8x32xf32>
    %11 = arith.mulf %9, %10 : vector<8x32xf32>
    %12 = math.exp %11 : vector<8x32xf32>
    %cst_7 = arith.constant dense<0.000000e+00> : vector<8xf32>
    %13 = vector.multi_reduction <add>, %12, %cst_7 [1] : vector<8x32xf32> to vector<8xf32>
    %14 = vector.shape_cast %13 : vector<8xf32> to vector<8x1xf32>
    %15 = math.log %14 : vector<8x1xf32>
    %16 = arith.mulf %12, %12 : vector<8x32xf32>
    %17 = arith.mulf %16, %16 : vector<8x32xf32>
    %cst_8 = arith.constant dense<0.000000e+00> : vector<8xf32>
    %18 = vector.multi_reduction <add>, %17, %cst_8 [1] : vector<8x32xf32> to vector<8xf32>
    %19 = vector.shape_cast %18 : vector<8xf32> to vector<8x1xf32>
    %20 = math.log %19 : vector<8x1xf32>
    %cst_9 = arith.constant 2.500000e-01 : f32
    %21 = vector.broadcast %cst_9 : f32 to vector<8x32xf32>
    %22 = arith.mulf %4, %21 : vector<8x32xf32>
    %cst_10 = arith.constant dense<0xFF800000> : vector<8xf32>
    %23 = vector.multi_reduction <maximumf>, %22, %cst_10 [1] : vector<8x32xf32> to vector<8xf32>
    %24 = vector.shape_cast %23 : vector<8xf32> to vector<8x1xf32>
    %25 = vector.broadcast %24 : vector<8x1xf32> to vector<8x32xf32>
    %26 = arith.subf %22, %25 : vector<8x32xf32>
    %27 = math.exp %26 : vector<8x32xf32>
    %cst_11 = arith.constant dense<0.000000e+00> : vector<8xf32>
    %28 = vector.multi_reduction <add>, %27, %cst_11 [1] : vector<8x32xf32> to vector<8xf32>
    %29 = vector.shape_cast %28 : vector<8xf32> to vector<8x1xf32>
    %30 = math.log %29 : vector<8x1xf32>
    %31 = arith.subf %26, %11 : vector<8x32xf32>
    %32 = arith.mulf %27, %31 : vector<8x32xf32>
    %cst_12 = arith.constant dense<0.000000e+00> : vector<8xf32>
    %33 = vector.multi_reduction <add>, %32, %cst_12 [1] : vector<8x32xf32> to vector<8xf32>
    %34 = vector.shape_cast %33 : vector<8xf32> to vector<8x1xf32>
    %35 = tpu.reciprocal %29 : vector<8x1xf32> -> vector<8x1xf32>
    %36 = arith.mulf %34, %35 : vector<8x1xf32>
    %37 = arith.subf %15, %30 : vector<8x1xf32>
    %38 = arith.addf %36, %37 : vector<8x1xf32>
    %39 = tpu.iota {dimensions = array<i32: 1>} : vector<8x32xi32>
    %40 = vector.broadcast %5 : vector<8x1xi32> to vector<8x32xi32>
    %41 = arith.cmpi eq, %39, %40 : vector<8x32xi32>
    %cst_13 = arith.constant 0.000000e+00 : f32
    %42 = vector.broadcast %cst_13 : f32 to vector<8x32xf32>
    %43 = arith.select %41, %9, %42 : vector<8x32xi1>, vector<8x32xf32>
    %cst_14 = arith.constant dense<0.000000e+00> : vector<8xf32>
    %44 = vector.multi_reduction <add>, %43, %cst_14 [1] : vector<8x32xf32> to vector<8xf32>
    %45 = vector.shape_cast %44 : vector<8xf32> to vector<8x1xf32>
    %46 = arith.subf %20, %45 : vector<8x1xf32>
    %c2_i32 = arith.constant 2 : i32
    %47 = arith.muli %arg0, %c2_i32 : i32
    %48 = arith.addi %47, %arg1 : i32
    %49 = tpu.iota {dimensions = array<i32: 0>} : vector<8x1xi32>
    %c8_i32 = arith.constant 8 : i32
    %50 = arith.muli %48, %c8_i32 : i32
    %51 = vector.broadcast %50 : i32 to vector<8x1xi32>
    %52 = arith.addi %49, %51 : vector<8x1xi32>
    %c20_i32 = arith.constant 20 : i32
    %53 = vector.broadcast %c20_i32 : i32 to vector<8x1xi32>
    %54 = arith.cmpi slt, %52, %53 : vector<8x1xi32>
    %c0_15 = arith.constant 0 : index
    %c0_16 = arith.constant 0 : index
    %55 = vector.load %arg6[%c0_15, %c0_16] : memref<8x1xf32, #tpu.memory_space<vmem>>, vector<8x1xf32>
    %cst_17 = arith.constant 0.000000e+00 : f32
    %56 = vector.broadcast %cst_17 : f32 to vector<8x1xf32>
    %57 = arith.select %54, %38, %56 : vector<8x1xi1>, vector<8x1xf32>
    %58 = arith.addf %55, %57 : vector<8x1xf32>
    %c0_18 = arith.constant 0 : index
    %c0_19 = arith.constant 0 : index
    %59 = vector.load %arg6[%c0_18, %c0_19] : memref<8x1xf32, #tpu.memory_space<vmem>>, vector<8x1xf32>
    tpu.vector_store %arg6[%c0_18, %c0_19], %58 {strides = array<i32>} : memref<8x1xf32, #tpu.memory_space<vmem>>, vector<8x1xf32>,
    %c0_20 = arith.constant 0 : index
    %c0_21 = arith.constant 0 : index
    %60 = vector.load %arg7[%c0_20, %c0_21] : memref<8x1xf32, #tpu.memory_space<vmem>>, vector<8x1xf32>
    %cst_22 = arith.constant 0.000000e+00 : f32
    %61 = vector.broadcast %cst_22 : f32 to vector<8x1xf32>
    %62 = arith.select %54, %46, %61 : vector<8x1xi1>, vector<8x1xf32>
    %63 = arith.addf %60, %62 : vector<8x1xf32>
    %c0_23 = arith.constant 0 : index
    %c0_24 = arith.constant 0 : index
    %64 = vector.load %arg7[%c0_23, %c0_24] : memref<8x1xf32, #tpu.memory_space<vmem>>, vector<8x1xf32>
    tpu.vector_store %arg7[%c0_23, %c0_24], %63 {strides = array<i32>} : memref<8x1xf32, #tpu.memory_space<vmem>>, vector<8x1xf32>,
    %c1_i32 = arith.constant 1 : i32
    %65 = arith.cmpi eq, %arg1, %c1_i32 : i32
    %66 = arith.extui %65 : i1 to i32
    %c0_i32_25 = arith.constant 0 : i32
    %67 = arith.cmpi ne, %66, %c0_i32_25 : i32
    scf.if %67 {
      %c0_26 = arith.constant 0 : index
      %c0_27 = arith.constant 0 : index
      %68 = vector.load %arg6[%c0_26, %c0_27] : memref<8x1xf32, #tpu.memory_space<vmem>>, vector<8x1xf32>
      %69 = vector.shape_cast %68 : vector<8x1xf32> to vector<1x8x1xf32>
      %cst_28 = arith.constant dense<0.000000e+00> : vector<1xf32>
      %70 = vector.multi_reduction <add>, %69, %cst_28 [1, 2] : vector<1x8x1xf32> to vector<1xf32>
      %71 = vector.shape_cast %70 : vector<1xf32> to vector<1x1x1xf32>
      %72 = vector.extract %71[0, 0, 0] : f32 from vector<1x1x1xf32>
      %c0_29 = arith.constant 0 : index
      %c0_30 = arith.constant 0 : index
      %73 = vector.load %arg7[%c0_29, %c0_30] : memref<8x1xf32, #tpu.memory_space<vmem>>, vector<8x1xf32>
      %74 = vector.shape_cast %73 : vector<8x1xf32> to vector<1x8x1xf32>
      %cst_31 = arith.constant dense<0.000000e+00> : vector<1xf32>
      %75 = vector.multi_reduction <add>, %74, %cst_31 [1, 2] : vector<1x8x1xf32> to vector<1xf32>
      %76 = vector.shape_cast %75 : vector<1xf32> to vector<1x1x1xf32>
      %77 = vector.extract %76[0, 0, 0] : f32 from vector<1x1x1xf32>
      %78 = tpu.iota {dimensions = array<i32: 1>} : vector<1x8x128xi32>
      %c0_i32_32 = arith.constant 0 : i32
      %79 = vector.broadcast %c0_i32_32 : i32 to vector<1x8x128xi32>
      %80 = arith.cmpi eq, %78, %79 : vector<1x8x128xi32>
      %c1_i32_33 = arith.constant 1 : i32
      %81 = vector.broadcast %c1_i32_33 : i32 to vector<1x8x128xi32>
      %82 = arith.cmpi eq, %78, %81 : vector<1x8x128xi32>
      %cst_34 = arith.constant 0.000000e+00 : f32
      %83 = vector.broadcast %77 : f32 to vector<1x8x128xf32>
      %84 = vector.broadcast %cst_34 : f32 to vector<1x8x128xf32>
      %85 = arith.select %82, %83, %84 : vector<1x8x128xi1>, vector<1x8x128xf32>
      %86 = vector.broadcast %72 : f32 to vector<1x8x128xf32>
      %87 = arith.select %80, %86, %85 : vector<1x8x128xi1>, vector<1x8x128xf32>
      %c0_35 = arith.constant 0 : index
      %c0_36 = arith.constant 0 : index
      %c0_37 = arith.constant 0 : index
      %88 = vector.load %arg5[%c0_35, %c0_36, %c0_37] : memref<1x8x128xf32, #tpu.memory_space<vmem>>, vector<1x8x128xf32>
      tpu.vector_store %arg5[%c0_35, %c0_36, %c0_37], %87 {strides = array<i32>} : memref<1x8x128xf32, #tpu.memory_space<vmem>>, vector<1x8x128xf32>,
    } else {
    }
    return
  }
  func.func @transform_0(%arg0: i32, %arg1: i32) -> (i32, i32) {
    %c2_i32 = arith.constant 2 : i32
    %0 = arith.muli %arg0, %c2_i32 : i32
    %1 = arith.addi %0, %arg1 : i32
    %c2_i32_0 = arith.constant 2 : i32
    %2 = arith.minsi %1, %c2_i32_0 : i32
    %c0_i32 = arith.constant 0 : i32
    %c0_i32_1 = arith.constant 0 : i32
    return %2, %c0_i32 : i32, i32
  }
  func.func @transform_1(%arg0: i32, %arg1: i32) -> (i32, i32) {
    %c2_i32 = arith.constant 2 : i32
    %0 = arith.muli %arg0, %c2_i32 : i32
    %1 = arith.addi %0, %arg1 : i32
    %c2_i32_0 = arith.constant 2 : i32
    %2 = arith.minsi %1, %c2_i32_0 : i32
    %c0_i32 = arith.constant 0 : i32
    %c0_i32_1 = arith.constant 0 : i32
    return %2, %c0_i32 : i32, i32
  }
  func.func @transform_2(%arg0: i32, %arg1: i32) -> (i32, i32) {
    %c2_i32 = arith.constant 2 : i32
    %0 = arith.muli %arg0, %c2_i32 : i32
    %1 = arith.addi %0, %arg1 : i32
    %c2_i32_0 = arith.constant 2 : i32
    %2 = arith.minsi %1, %c2_i32_0 : i32
    %c0_i32 = arith.constant 0 : i32
    %c0_i32_1 = arith.constant 0 : i32
    return %2, %c0_i32 : i32, i32
  }
  func.func @transform_3(%arg0: i32, %arg1: i32) -> (i32, i32, i32) {
    %c0_i32 = arith.constant 0 : i32
    %c0_i32_0 = arith.constant 0 : i32
    %c0_i32_1 = arith.constant 0 : i32
    return %arg0, %c0_i32, %c0_i32_0 : i32, i32, i32
  }
}

</mosaic_0001>

<bundles_post_ra>
// kernel: tpu_custom_call.1
= control target key start
LH: loop header
LB: loop body
LE: loop exit
PB: predicated region body
PF: predicated region fallthrough
CT: control target
= control target key end

     0   :  { %8 = vsyncpa [#allocation5], 0  ;;  %s1101_s0 = inlined_call_operand.vmem [shape: f32[20,32], index: 0, kind: input, shape index: {}]   ;;  %s1102_s1 = inlined_call_operand.hbm [shape: f32[20,32], index: 1, kind: input, shape index: {}]   ;;  %s1103_s2 = inlined_call_operand.vmem [shape: s32[20,1], index: 2, kind: input, shape index: {}]   ;;  %s1104_s3 = inlined_call_operand.hbm [shape: f32[2,8,128], index: 3, kind: output, shape index: {}]  }
   0x1   :  { %10 = vsyncpa [#allocation5 + $0x1], 0 }
   0x2   :  { %11 = vsyncpa [#allocation6], 0 }
   0x3   :  { %13 = vsyncpa [#allocation6 + $0x1], 0  ;;  %s884_s12 = smov 0   ;;  %s886_s13 = smov 0  }
   0x4   :  { %s888_s14 = smov 0   ;;  %s890_s15 = smov 0  }
   0x5   :  { %s892_s16 = smov 0   ;;  %s894_s17 = smov 0  }
   0x6   :  { %s896_s18 = smov 0   ;;  %s898_s19 = smov 0  }
   0x7   :  { %s900_s20 = smov 0   ;;  %s902_s21 = smov 0  }
   0x8   :  { %s904_s22 = smov 0  }
   0x9 LB: > { %1109 = sst [smem:[#allocation10_spill]] %s852_s20  ;;  %s552_s23 = sadd.s32 4294967295, %s860_s22   ;;  %s860_s22 = sphi %s904_s22, %s19_s22   ;;  %s856_s21 = sphi %s902_s21, %s1120_s21   ;;  %s852_s20 = sphi %s900_s20, %s1119_s20   ;;  %s848_s19 = sphi %s898_s19, %s1118_s19   ;;  %s844_s18 = sphi %s896_s18, %s1117_s18   ;;  %s840_s17 = sphi %s894_s17, %s1126_s17   ;;  %s836_s16 = sphi %s892_s16, %s1125_s16   ;;  %s832_s15 = sphi %s890_s15, %s1124_s15   ;;  %s828_s14 = sphi %s888_s14, %s1123_s14   ;;  %s824_s13 = sphi %s886_s13, %s1122_s13   ;;  %s820_s12 = sphi %s884_s12, %s1121_s12  }
   0xa   : > { %1110 = sst [smem:[#allocation11_spill]] %s856_s21  ;;  %s553_s24 = sadd.s32 4294967294, %s860_s22  }
   0xb   : > { %s28_s25 = sadd.s32 1, %s852_s20  ;;  %s31_s26 = sadd.s32 1, %s856_s21 }
   0xc   : > { %p29_p0 = scmp.ge.s32.totalorder %s28_s25, 2  ;;  %s556_s27 = sshll.u32 %s856_s21, 1 }
   0xd   : > { %s70_s28 = sadd.s32 %s852_s20, %s556_s27  ;;  %s80_s29 = sadd.s32 1, %s840_s17 }
   0xe   : > { %s1128_s25 = smov (%p29_p0, %s28_s25), 0  ;;  %s1130_s26 = smov (!%p29_p0, %s31_s26), %s856_s21 }
   0xf   : > { %1111 = sst [smem:[#allocation12_spill]] %s1128_s25  ;;  %p71_p1 = scmp.lt.s32.totalorder %s70_s28, 2 }
  0x10   : > { %p87_p2 = scmp.ne.s32.totalorder %s840_s17, %s836_s16  ;;  %p33_p3 = scmp.ge.s32.totalorder %s1130_s26, 2 }
  0x11   : > { %p88_p4 = scmp.eq.s32.totalorder %s860_s22, 0  ;;  %s1132_s28 = smov (!%p71_p1, %s70_s28), 2 }
  0x12   : > { %s1134_s26 = smov (%p33_p3, %s1130_s26), 0  ;;  %p93_p6 = scmp.ne.s32.totalorder %s836_s16, %s832_s15 }
  0x13   : > { %1112 = sst [smem:[#allocation13_spill]] %s1134_s26  ;;  %p954_p5 = por %p88_p4, %p87_p2 }
  0x14   : > { %s557_s4 = sshll.u32 %s1134_s26, 1  ;;  %p94_p7 = scmp.eq.s32.totalorder %s552_s23, 0 }
  0x15   : > { %s74_s5 = sadd.s32 %s557_s4, %s1128_s25  ;;  %s137_s6 = ssub.s32 %s856_s21, %s1134_s26 }
  0x16   : > { %p75_p8 = scmp.lt.s32.totalorder %s74_s5, 2  ;;  %p966_p9 = por %p94_p7, %p93_p6 }
  0x17   : > { %p138_p10 = scmp.eq.s32.totalorder %s137_s6, 0  ;;  %s140_s8 = sadd.s32 1, %s828_s14 }
  0x18   : > { %s1136_s5 = smov (!%p75_p8, %s74_s5), 2  ;;  %p150_p11 = scmp.ne.s32.totalorder %s828_s14, %s824_s13 }
  0x19   : > { %s972_s9 = scalar_select %p138_p10, %s828_s14, %s140_s8  }
  0x1a   : > { %s77_s10 = ssub.s32 %s1132_s28, %s1136_s5  ;;  %p151_p13 = scmp.eq.s32.totalorder %s552_s23, 3 }
  0x1b   : > { %p78_p12 = scmp.eq.s32.totalorder %s77_s10, 0  ;;  %p156_p0 = scmp.ne.s32.totalorder %s824_s13, %s820_s12 }
  0x1c   : > { %p157_p1 = scmp.eq.s32.totalorder %s553_s24, 3  ;;  %p985_p2 = por %p151_p13, %p150_p11 }
  0x1d   : > { %s983_s11 = scalar_select %p78_p12, %s840_s17, %s80_s29  }
  0x1e   : > { %p989_p3 = por %p157_p1, %p156_p0  ;;  %p602_p4 = scmp.lt.s32.totalorder %s860_s22, 4 }
  0x1f   : > { %s192_s4 = sand.u32 1, %s840_s17   ;;  %s564_s5 = sshll.u32 %s1132_s28, 3 }
  0x20   : > { %s562_s23 = sshll.u32 %s192_s4, 3  ;;  %s204_s10 = scalar_lea.hbm %s1102_s1, %s564_s5 }
  0x21   : > { %s206_s24 = sshll.u32 %s204_s10, 4  ;;  %s196_s26 = scalar_lea.vmem [#allocation4], %s562_s23  ;;  %s207_s24 = int_to_ptr.hbm [resolvable:$true] %s206_s24 }
  0x22   : > { %s208_s29 = sshll.u32 %s196_s26, 4  ;;  %p595_p6 = pnand %p602_p4, %p954_p5  ;;  %s209_s29 = int_to_ptr.vmem [resolvable:$true] %s208_s29 }
  0x23   : > { %p565_p7 = scmp.ge.s32.totalorder %s860_s22, 1  ;;  %p228_p8 = scmp.lt.s32.totalorder %s860_s22, 5 }
  0x24   : > { %s193_s25 = scalar_lea.sflag [#allocation5], %s192_s4 }
  0x25   : > { %597 = dma.hbm_to_vmem [thread:$0]  (!%p595_p6), %s207_s24, 128, %s209_s29, %s193_s25  }
  0x26   : > { %p229_p10 = pnand %p565_p7, %p228_p8 }
  0x27   : > { %s234_s28 = sand.u32 (!%p229_p10), 1, %s836_s16  }
  0x28   : > { %232 = sbr.rel (%p229_p10) target bundleno = 547 (0x223), region = 32  ;;  %s566_s21 = sshll.u32 (!%p229_p10), %s234_s28, 3 }
  0x29   : > { %s235_s20 = scalar_lea.sflag (!%p229_p10), [#allocation5], %s234_s28  ;;  %s238_s6 = scalar_lea.vmem (!%p229_p10), [#allocation4], %s566_s21 }
  0x2d   : > { %811 = dma.done.wait (%p966_p9), %s235_s20, 128  }
  0x2e   : > { %813 = vsyncadd (%p966_p9), %s235_s20, 4294967168  ;;  %s275_s26 = sand.u32 1, %s824_s13   ;;  %s568_s30 = sshll.u32 %s848_s19, 1 }
  0x2f   : > { %s1011_s25 = sshll.u32 %s275_s26, 3  ;;  %s1014_s4 = sadd.s32 %s844_s18, %s568_s30 }
  0x30   : > { %p280_p5 = scmp.lt.s32.totalorder %s1014_s4, 2  ;;  %s277_s29 = scalar_lea.vmem [#allocation7], %s1011_s25 }
  0x31   : > { %p578_p9 = scmp.ne.s32.totalorder %s844_s18, 0 }
  0x32   : > { %s281_s21 = scalar_select %p280_p5, %s1014_s4, 2 }
  0x33   : > { %309 = sbr.rel (%p578_p9) target bundleno = 59 (0x3b), region = 40 }
  0x34   : > { %s1138_s21 = smov (!%p280_p5, %s281_s21), 2 }
  0x35   : > { %s572_s5 = sshll.u32 %s1138_s21, 3 }
  0x36   : > { %s285_s23 = scalar_lea.vmem %s1101_s0, %s572_s5  ;;  %s301_s24 = scalar_lea.vmem %s1103_s2, %s572_s5 }
  0x38   : > { %vm310_vm0 = vcmask 7168   ;;  %v862_v0 = vmov 0.0  }
  0x39   : > { %311 = vst.msk [vmem:[#allocation2] sm:$0xff] %vm310_vm0, %v862_v0 }
  0x3a   : > { %312 = vst.msk [vmem:[#allocation3] sm:$0xff] %vm310_vm0, %v862_v0 }
  0x3b PF: > { %v314_v1 = vld [vmem:[%s238_s6] sm:$0xff]  ;;  %vm316_vm1 = vcmask 261120   ;;  %v315_v2 = vld [vmem:[%s301_s24] sm:$0xff]  ;;  %v863_v4 = vmov 0   ;;  %v370_v23 = vlaneseq  ;;  %s580_s28 = sshll.u32 %s1014_s4, 3  ;;  %vm392_vm8 = vcmask 7168  }
  0x3c   : > { %v336_v3 = vmul.f32 0.25, %v314_v1  ;;  %694 = vset.pattern.permute.xlu1 %v863_v4  ;;  %695 = vset.pattern.permute.xlu0 %v863_v4  ;;  %v313_v6 = vld [vmem:[%s285_s23] sm:$0xff]  ;;  %v386_v40 = vstv %s580_s28  ;;  %p581_p11 = scmp.ne.s32.totalorder %s844_s18, 1 }
  0x3d   : > { %373 = vperm.xlu1 %694, %v315_v2   ;;  %v317_v7 = vsel %vm316_vm1, %v313_v6, -inf  ;;  %v371_v25 = vand.u32 127, %v370_v23  ;;  %v1034_v38 = vshrl.u32 %v370_v23, 7 }
  0x3e   : > { %v337_v5 = vsel %vm316_vm1, %v336_v3, -inf }
  0x3f   : > { %338 = vmax.xlane.f32.xlu0 %v337_v5  ;;  %v387_v46 = vadd.s32 %v386_v40, %v1034_v38 }
  0x40   : > { %v389_v54 = vld [vmem:[#allocation2] sm:$0xff] }
  0x41   : > { %vm388_vm7 = vcmp.lt.s32.totalorder %v387_v46, 20  ;;  %v394_v60 = vld [vmem:[#allocation3] sm:$0xff] }
  0x47   : > { %318 = vmax.xlane.f32.xlu0 %v317_v7 }
  0xaf   : > { %v374_v26 = vpop.permute.xlu1 %373 }
  0xb0   : > { %vm375_vm2 = vcmp.eq.s32.totalorder %v371_v25, %v374_v26 }
  0xb2   : > { %v339_v8 = vpop.xlane.xlu0 %338 }
  0xb3   : > { %v340_v9 = vsub.f32 %v336_v3, %v339_v8 }
  0xb5   : > { %v341_v10 = vmul.f32 1.442695, %v340_v9 }
  0xb7   : > { %696 = vpow2.f32 %v341_v10 }
  0xba   : > { %v319_v11 = vpop.xlane.xlu0 %318 }
  0xbb   : > { %v320_v12 = vsub.f32 %v313_v6, %v319_v11 }
  0xbd   : > { %v697_v13 = vpop.eup %696  ;;  %v321_v14 = vmul.f32 0.25, %v320_v12  ;;  %v376_v28 = vsel %vm375_vm2, %v320_v12, 0.0 }
  0xbe   : > { %v343_v15 = vsel %vm316_vm1, %v697_v13, 0.0  ;;  %v377_v29 = vsel %vm316_vm1, %v376_v28, 0.0 }
  0xbf   : > { %v322_v16 = vmul.f32 1.442695, %v321_v14  ;;  %344 = vadd.xlane.f32.xlu1 %v343_v15  ;;  %v348_v17 = vsub.f32 %v340_v9, %v321_v14 }
  0xc1   : > { %698 = vpow2.f32 %v322_v16  ;;  %v349_v18 = vmul.f32 %v697_v13, %v348_v17 }
  0xc3   : > { %v350_v19 = vsel %vm316_vm1, %v349_v18, 0.0 }
  0xc4   : > { %351 = vadd.xlane.f32.xlu0 %v350_v19 }
  0xc7   : > { %v699_v20 = vpop.eup %698 }
  0xc8   : > { %v324_v21 = vsel %vm316_vm1, %v699_v20, 0.0  ;;  %v329_v22 = vmul.f32 %v699_v20, %v699_v20 }
  0xc9   : > { %325 = vadd.xlane.f32.xlu2 %v324_v21 }
  0xca   : > { %v330_v24 = vmul.f32 %v329_v22, %v329_v22 }
  0xcc   : > { %v331_v27 = vsel %vm316_vm1, %v330_v24, 0.0 }
  0xd1   : > { %332 = vadd.xlane.f32.xlu2 %v331_v27 }
  0xd9   : > { %378 = vadd.xlane.f32.xlu2 %v377_v29 }
 0x132   : > { %v345_v30 = vpop.xlane.xlu1 %344 }
 0x133   : > { %700 = vrcp.f32 %v345_v30  ;;  %v364_v35 = vand.u32 2147483648, %v345_v30  ;;  %v362_v37 = vand.u32 2147483647, %v345_v30  ;;  %vm358_vm4 = vweird.f32 %v345_v30 }
 0x134   : > { %702 = vlog2.f32 %v345_v30 }
 0x135   : > { %v365_v42 = vor.u32 1.1754944e-38, %v364_v35  ;;  %vm363_vm6 = vcmp.eq.f32.partialorder %v362_v37, 8.507059e+37 }
 0x137   : > { %v352_v50 = vpop.xlane.xlu0 %351 }
 0x139   : > { %v701_v31 = vpop.eup %700 }
 0x13a   : > { %v354_v32 = vmul.f32 %v701_v31, %v345_v30  ;;  %vm359_vm3 = vweird.f32 %v701_v31  ;;  %v703_v41 = vpop.eup %702 }
 0x13b   : > { %vm360_vm5 = vmor %vm358_vm4, %vm359_vm3  ;;  %v347_v47 = vmul.f32 0.6931472, %v703_v41 }
 0x13c   : > { %v355_v33 = vsub.f32 1.0, %v354_v32  ;;  %v326_v34 = vpop.xlane.xlu2 %325 }
 0x13d   : > { %704 = vlog2.f32 %v326_v34 }
 0x13e   : > { %v356_v36 = vmul.f32 %v701_v31, %v355_v33 }
 0x140   : > { %v357_v39 = vadd.f32 %v701_v31, %v356_v36 }
 0x142   : > { %v361_v43 = vsel %vm360_vm5, %v701_v31, %v357_v39 }
 0x143   : > { %v705_v44 = vpop.eup %704  ;;  %v366_v45 = vsel %vm363_vm6, %v365_v42, %v361_v43 }
 0x144   : > { %v328_v48 = vmul.f32 0.6931472, %v705_v44  ;;  %v333_v49 = vpop.xlane.xlu2 %332  ;;  %v367_v51 = vmul.f32 %v366_v45, %v352_v50 }
 0x145   : > { %706 = vlog2.f32 %v333_v49 }
 0x146   : > { %v368_v52 = vsub.f32 %v328_v48, %v347_v47 }
 0x148   : > { %v369_v53 = vadd.f32 %v368_v52, %v367_v51 }
 0x14a   : > { %v390_v55 = vsel %vm388_vm7, %v369_v53, 0.0 }
 0x14b   : > { %v707_v56 = vpop.eup %706  ;;  %v391_v57 = vadd.f32 %v390_v55, %v389_v54 }
 0x14c   : > { %v335_v58 = vmul.f32 0.6931472, %v707_v56  ;;  %v379_v59 = vpop.xlane.xlu2 %378 }
 0x14d   : > { %393 = vst.msk [vmem:[#allocation2] sm:$0xff] %vm392_vm8, %v391_v57 }
 0x14e   : > { %v380_v61 = vsub.f32 %v335_v58, %v379_v59 }
 0x14f   : > { %401 = sbr.rel (%p581_p11) target bundleno = 532 (0x214), region = 44 }
 0x150   : > { %v395_v62 = vsel %vm388_vm7, %v380_v61, 0.0 }
 0x151   : > { %v396_v63 = vadd.f32 %v395_v62, %v394_v60 }
 0x153   : > { %397 = vst.msk [vmem:[#allocation3] sm:$0xff] %vm392_vm8, %v396_v63 }
 0x154   : > { %v402_v0 = vld [vmem:[#allocation2] sm:$0xff]  ;;  %vm425_vm9 = vcmp.eq.s32.totalorder %v1034_v38, 1  ;;  %vm424_vm10 = vcmp.eq.s32.totalorder %v1034_v38, 0 }
 0x155   : > { %v403_v1 = vsel %vm392_vm8, %v402_v0, 0.0 }
 0x156   : > { %404 = vadd.xlane.f32.xlu0 %v403_v1 }
 0x15a   : > { %v413_v2 = vld [vmem:[#allocation3] sm:$0xff] }
 0x15b   : > { %v414_v3 = vsel %vm392_vm8, %v413_v2, 0.0 }
 0x15e   : > { %415 = vadd.xlane.f32.xlu0 %v414_v3 }
 0x1c9   : > { %v405_v4 = vpop.xlane.xlu0 %404 }
 0x1ca   : > { %v406_v5 = vrot.slane %v405_v4, 4 }
 0x1cc   : > { %v407_v6 = vadd.f32 %v406_v5, %v405_v4 }
 0x1ce   : > { %v408_v7 = vrot.slane %v407_v6, 2 }
 0x1d0   : > { %v409_v8 = vadd.f32 %v408_v7, %v407_v6 }
 0x1d1   : > { %v416_v9 = vpop.xlane.xlu0 %415 }
 0x1d2   : > { %v417_v10 = vrot.slane %v416_v9, 4  ;;  %v410_v11 = vrot.slane %v409_v8, 1 }
 0x1d4   : > { %v418_v12 = vadd.f32 %v417_v10, %v416_v9  ;;  %v411_v13 = vadd.f32 %v410_v11, %v409_v8 }
 0x1d6   : > { %v419_v14 = vrot.slane %v418_v12, 2  ;;  %586 = vpush %v411_v13 }
 0x1d8   : > { %v420_v15 = vadd.f32 %v419_v14, %v418_v12 }
 0x1da   : > { %v421_v16 = vrot.slane %v420_v15, 1 }
 0x1dc   : > { %v422_v17 = vadd.f32 %v421_v16, %v420_v15 }
 0x1de   : > { %588 = vpush %v422_v17 }
 0x207   : > { %s587_s18 = spop %586 }
 0x208   : > { %v428_v19 = vstv %s587_s18 }
 0x20f   : > { %s589_s6 = spop %588 }
 0x210   : > { %v426_v18 = vstv %s589_s6 }
 0x211   : > { %v427_v20 = vsel %vm425_vm9, %v426_v18, 0.0 }
 0x212   : > { %v429_v21 = vsel %vm424_vm10, %v428_v19, %v427_v20 }
 0x213   : > { %430 = vst [vmem:[%s277_s29] sm:$0xff] %v429_v21 }
 0x214 PF: > { %s583_s30 = sshll.u32 %s848_s19, 3  ;;  %s444_s7 = sshll.u32 %s277_s29, 4  ;;  %s445_s7 = int_to_ptr.vmem [resolvable:$true] %s444_s7 }
 0x215   : > { %s442_s5 = scalar_lea.hbm %s1104_s3, %s583_s30  ;;  %s432_s23 = scalar_lea.sflag [#allocation6], %s275_s26 }
 0x216   : > { %s446_s20 = sshll.u32 %s442_s5, 4  ;;  %s758_s28 = scalar_lea.hbm %s1104_s3, 16  ;;  %s447_s20 = int_to_ptr.hbm [resolvable:$true] %s446_s20 }
 0x217   : > { %s752_s8 = sshra.s32 %s447_s20, 4  ;;  %s753_s8 = int_to_ptr.hbm [resolvable:$true] %s752_s8 }
 0x218   : > { %s754_s10 = scalar_lea.hbm %s753_s8, 8  ;;  %p759_p1 = scmp.lt.s32.totalorder %s753_s8, %s1104_s3 }
 0x219   : > { %p755_p12 = scmp.ne.s32.totalorder %s753_s8, %s754_s10  ;;  %p760_p4 = scmp.lt.s32.totalorder %s758_s28, %s754_s10 }
 0x21b   : > { %p756_p13 = pnand %p755_p12, %p985_p2  ;;  %p761_p6 = por %p760_p4, %p759_p1 }
 0x21d   : > { %p757_p0 = pneg %p756_p13 }
 0x21f   : > { %p762_p7 = pnand %p761_p6, %p757_p0 }
 0x221   : > { %765 = shalt.err (!%p762_p7)
}
 0x222   : > { %592 = dma.vmem_to_hbm [thread:$0]  (%p985_p2), %s445_s7, 128, %s447_s20, %s432_s23  }
 0x223 PF: > { %p603_p8 = scmp.ge.s32.totalorder %s860_s22, 2  ;;  %s458_s26 = sand.u32 1, %s820_s12  }
 0x224   : > { %s459_s25 = scalar_lea.sflag [#allocation6], %s458_s26 }
 0x225   : > { %p599_p10 = pnand %p603_p8, %p989_p3 }
 0x227   : > { %p600_p5 = pneg %p599_p10 }
 0x229   : > { %815 = dma.done.wait (%p600_p5), %s459_s25, 128  }
 0x22a   : > { %817 = vsyncadd (%p600_p5), %s459_s25, 4294967168  ;;  %s19_s22 = sadd.s32 1, %s860_s22   ;;  %s1117_s18 = sld [smem:[#allocation10_spill]] }
 0x22b   : > { %p16_p9 = scmp.ge.s32.totalorder %s19_s22, 6   ;;  %s1118_s19 = sld [smem:[#allocation11_spill]] }
 0x22c   : > { %s1119_s20 = sld [smem:[#allocation12_spill]]  ;;  %s1121_s12 = smov %s824_s13 }
 0x22d   : > { %s1120_s21 = sld [smem:[#allocation13_spill]]  ;;  %s1122_s13 = smov %s828_s14 }
 0x22e   : > { %s1123_s14 = smov %s972_s9  ;;  %s1124_s15 = smov %s836_s16 }
 0x22f   : > { %s1125_s16 = smov %s840_s17  ;;  %s1126_s17 = smov %s983_s11 }
 0x230   :  { %18 = sbr.rel (!%p16_p9) target bundleno = 9 (0x9), region = 91 }
 0x235   :  { %465 = vsyncpa [#allocation5], 1 }
 0x236   :  { %467 = vsyncpa [#allocation5 + $0x1], 1 }
 0x237   :  { %468 = vsyncpa [#allocation6], 1 }
 0x238   :  { %470 = vsyncpa [#allocation6 + $0x1], 1 }

</bundles_post_ra>
